<compile_context>
chip_gen: v7x
topology: tpu7x:2x2x1
jax: 0.10.0
libtpu: 0.0.40
codegen_flags: <defaults>
</compile_context>

<pallas_src>
import jax
import jax.numpy as jnp
from jax import lax
from jax.experimental import pallas as pl
from jax.experimental.pallas import tpu as pltpu

EPS = 1e-10


def l2norm_kernel(x_ref, o_ref):
    # Square + lane-reduce (VPU/XLU) in f32, rsqrt (EUP), scale (VPU, input dtype).
    x = x_ref[...]
    xf = x.astype(jnp.float32)
    ss = jnp.sum(xf * xf, axis=-1, keepdims=True)      # per-row sum over D
    inv = lax.rsqrt(ss + EPS)                           # 1/sqrt(sum + eps)
    o_ref[...] = (x * inv.astype(x.dtype)).astype(o_ref.dtype)


def _round_up(n, m):
    return ((n + m - 1) // m) * m


def l2norm(x, block_rows=None, *, target_block_rows=8192,
           vmem_block_budget=24 << 20):
    """L2-normalize each row of a 2-D array (N, D): x / sqrt(sum(x*x, -1) + eps)."""
    N, D = x.shape
    itemsize = jnp.dtype(x.dtype).itemsize
    # Packed-sublane multiple: 8 rows for 32-bit, 16 for bf16, 32 for int8/fp8.
    sub = max(8, 8 * (4 // itemsize))

    rounded_n = max(sub, _round_up(N, sub))

    if block_rows is None:
        # Largest row tile that amortizes per-step overhead while keeping the
        # VMEM footprint bounded: 4 pipeline block buffers (double-buffered
        # in + out) plus ~2 whole-block f32 intermediates (upcast x, x*x) when
        # the input is narrower than f32.
        per_row_bytes = D * itemsize * 4
        if itemsize < 4:
            per_row_bytes += D * 4 * 2
        rows_by_vmem = max(sub, vmem_block_budget // per_row_bytes)
        block_rows = min(target_block_rows, rows_by_vmem)

    # Keep >= 2 grid steps for big batches so v7x's two TensorCores can both
    # stream; tiny batches (the HardNet N=64 case) stay single-step — they are
    # launch/latency-bound, not bandwidth-bound.
    if rounded_n >= 4096:
        block_rows = min(block_rows, _round_up(pl.cdiv(rounded_n, 2), sub))

    block_rows = min(block_rows, rounded_n)
    block_rows = max(sub, (block_rows // sub) * sub)

    grid = (pl.cdiv(N, block_rows),)

    cost = pl.CostEstimate(
        flops=3 * N * D,                      # square, reduce-add, scale
        transcendentals=N,                    # one rsqrt per row
        bytes_accessed=2 * N * D * itemsize,  # read x + write out
    )

    return pl.pallas_call(
        l2norm_kernel,
        out_shape=jax.ShapeDtypeStruct((N, D), x.dtype),
        grid=grid,
        in_specs=[pl.BlockSpec((block_rows, D), lambda i: (i, 0))],
        out_specs=pl.BlockSpec((block_rows, D), lambda i: (i, 0)),
        compiler_params=pltpu.CompilerParams(
            dimension_semantics=("parallel",),
            # 32 MiB scoped VMEM: lifts v5e's 16 MiB default so the big tile
            # is shared across generations; matches v7x's default and leaves
            # ~50% headroom on its 64 MiB physical VMEM.
            vmem_limit_bytes=32 << 20,
        ),
        cost_estimate=cost,
    )(x)


if __name__ == "__main__":
    def ref_l2norm(x):
        # PyTorch reference semantics (f32 math, eps inside the sqrt).
        x32 = x.astype(jnp.float32)
        n = jnp.sqrt(jnp.sum(x32 * x32, axis=1, keepdims=True) + EPS)
        return (x32 / n).astype(x.dtype)

    key = jax.random.PRNGKey(0)

    # 1) HardNet-like shape: 64 descriptors of dim 128, f32, single-step grid.
    N, D = 64, 128
    x = jax.random.normal(key, (N, D), dtype=jnp.float32)
    out = jax.block_until_ready(l2norm(x))
    assert out.shape == x.shape and out.dtype == x.dtype
    # NOTE: lax.rsqrt (EUP) differs from sqrt-then-divide by a few ULPs.
    assert jnp.allclose(out, ref_l2norm(x), atol=2e-6, rtol=2e-6)

    # 2) Multi-step grid with a ragged edge block (N not a multiple of the tile).
    x2 = jax.random.normal(jax.random.PRNGKey(1), (200, 128), dtype=jnp.float32)
    out2 = jax.block_until_ready(l2norm(x2, block_rows=64))
    assert jnp.allclose(out2, ref_l2norm(x2), atol=2e-6, rtol=2e-6)

    # 3) bf16 path: packed-sublane (16-row) rounding + input-dtype final scale.
    x3 = jax.random.normal(jax.random.PRNGKey(2), (96, 128)).astype(jnp.bfloat16)
    out3 = jax.block_until_ready(l2norm(x3))
    assert out3.dtype == jnp.bfloat16
    assert jnp.allclose(out3.astype(jnp.float32),
                        ref_l2norm(x3).astype(jnp.float32),
                        atol=2e-2, rtol=2e-2)

    print("KERNEL_OK")
</pallas_src>

<mosaic_0001>
module attributes {stable_mosaic.version = 11 : i64} {
  func.func @l2norm_kernel(%arg0: i32, %arg1: memref<64x128xf32, #tpu.memory_space<vmem>>, %arg2: memref<64x128xf32, #tpu.memory_space<vmem>>) attributes {dimension_semantics = [#tpu.dimension_semantics<parallel>], iteration_bounds = array<i64: 1>, scalar_prefetch = 0 : i64, scratch_operands = 0 : i64, tpu.core_type = #tpu.core_type<tc>, window_params = [{transform_indices = @transform_0, window_bounds = array<i64: 64, 128>}, {transform_indices = @transform_1, window_bounds = array<i64: 64, 128>}]} {
    %c0 = arith.constant 0 : index
    %c0_0 = arith.constant 0 : index
    %0 = vector.load %arg1[%c0, %c0_0] : memref<64x128xf32, #tpu.memory_space<vmem>>, vector<64x128xf32>
    %1 = arith.mulf %0, %0 : vector<64x128xf32>
    %cst = arith.constant dense<0.000000e+00> : vector<64xf32>
    %2 = vector.multi_reduction <add>, %1, %cst [1] : vector<64x128xf32> to vector<64xf32>
    %3 = vector.shape_cast %2 : vector<64xf32> to vector<64x1xf32>
    %cst_1 = arith.constant 1.000000e-10 : f32
    %4 = vector.broadcast %cst_1 : f32 to vector<64x1xf32>
    %5 = arith.addf %3, %4 : vector<64x1xf32>
    %6 = math.rsqrt %5 : vector<64x1xf32>
    %7 = vector.broadcast %6 : vector<64x1xf32> to vector<64x128xf32>
    %8 = arith.mulf %0, %7 : vector<64x128xf32>
    %c0_2 = arith.constant 0 : index
    %c0_3 = arith.constant 0 : index
    %9 = vector.load %arg2[%c0_2, %c0_3] : memref<64x128xf32, #tpu.memory_space<vmem>>, vector<64x128xf32>
    tpu.vector_store %arg2[%c0_2, %c0_3], %8 {strides = array<i32>} : memref<64x128xf32, #tpu.memory_space<vmem>>, vector<64x128xf32>,
    return
  }
  func.func @transform_0(%arg0: i32) -> (i32, i32) {
    %c0_i32 = arith.constant 0 : i32
    %c0_i32_0 = arith.constant 0 : i32
    return %arg0, %c0_i32 : i32, i32
  }
  func.func @transform_1(%arg0: i32) -> (i32, i32) {
    %c0_i32 = arith.constant 0 : i32
    %c0_i32_0 = arith.constant 0 : i32
    return %arg0, %c0_i32 : i32, i32
  }
}

</mosaic_0001>

<bundles_post_ra>
// kernel: tpu_custom_call.1
= control target key start
LH: loop header
LB: loop body
LE: loop exit
PB: predicated region body
PF: predicated region fallthrough
CT: control target
= control target key end

     0   :  { %6 = vsyncpa [#allocation3], 0  ;;  %s216_s0 = inlined_call_operand.hbm [shape: f32[64,128], index: 0, kind: input, shape index: {}]   ;;  %s217_s1 = inlined_call_operand.hbm [shape: f32[64,128], index: 1, kind: output, shape index: {}]  }
   0x1   :  { %7 = vsyncpa [#allocation4], 0  ;;  %s172_s6 = smov [#allocation2]   ;;  %s124_s10 = scalar_lea.hbm %s216_s0, 1024 }
   0x2   :  { %s13_s7 = sshll.u32 %s172_s6, 4  ;;  %p125_p0 = scmp.ne.s32.totalorder %s216_s0, %s124_s10  ;;  %s14_s7 = int_to_ptr.vmem [resolvable:$true] %s13_s7 }
   0x3   :  { %p128_p1 = scmp.lt.u32.totalorder %s124_s10, %s216_s0 }
   0x5   :  { %p130_p2 = pnand %p128_p1, %p125_p0 }
   0x7   :  { %133 = shalt.err (!%p130_p2)
}
   0x8   :  { %s134_s15 = scalar_lea.vmem %s14_s7, 1024  ;;  %p139_p4 = scmp.lt.s32.totalorder %s14_s7, %s14_s7 }
   0x9   :  { %p135_p3 = scmp.ne.s32.totalorder %s14_s7, %s134_s15  ;;  %p140_p5 = scmp.lt.s32.totalorder %s134_s15, %s134_s15 }
   0xb   :  { %p141_p6 = por %p140_p5, %p139_p4 }
   0xd   :  { %p142_p7 = pnand %p141_p6, %p135_p3 }
   0xf   :  { %145 = shalt.err (!%p142_p7)
}
  0x10   :  { %s173_s16 = smov 128   ;;  %s174_s17 = smov 8  }
  0x11   :  { %19 = dma.hbm_to_vmem [thread:$0]  %s216_s0, 1024, %s14_s7, [#allocation3], %s173_s16, %s173_s16, %s174_s17  }
  0x12   :  { %168 = dma.done.wait [#allocation3], 1024  }
  0x13   :  { %169 = vsyncadd [#allocation3], 4294966272  ;;  %v25_v0 = vld [vmem:[#allocation2 + $0x10] sm:$0xff]  ;;  %v23_v1 = vld [vmem:[#allocation2] sm:$0xff]  ;;  %s175_s0 = smov [#allocation5]  }
  0x14   :  { %v26_v2 = vld [vmem:[#allocation2 + $0x18] sm:$0xff]  ;;  %v33_v3 = vmul.f32 %v25_v0, %v25_v0  ;;  %v31_v4 = vmul.f32 %v23_v1, %v23_v1  ;;  %v24_v5 = vld [vmem:[#allocation2 + $0x8] sm:$0xff]  ;;  %v27_v9 = vld [vmem:[#allocation2 + $0x20] sm:$0xff]  ;;  %s92_s20 = sshll.u32 %s175_s0, 4  ;;  %s93_s20 = int_to_ptr.vmem [resolvable:$true] %s92_s20 }
  0x15   :  { %v34_v6 = vmul.f32 %v26_v2, %v26_v2  ;;  %v32_v7 = vmul.f32 %v24_v5, %v24_v5  ;;  %v28_v8 = vld [vmem:[#allocation2 + $0x28] sm:$0xff]  ;;  %v35_v11 = vmul.f32 %v27_v9, %v27_v9  ;;  %v30_v12 = vld [vmem:[#allocation2 + $0x38] sm:$0xff]  ;;  %v29_v13 = vld [vmem:[#allocation2 + $0x30] sm:$0xff]  ;;  %s146_s21 = scalar_lea.vmem %s93_s20, 1024  ;;  %p151_p9 = scmp.lt.s32.totalorder %s93_s20, %s93_s20 }
  0x16   :  { %43 = vadd.xlane.f32.xlu1 %v33_v3  ;;  %39 = vadd.xlane.f32.xlu0 %v31_v4  ;;  %v36_v10 = vmul.f32 %v28_v8, %v28_v8  ;;  %v38_v14 = vmul.f32 %v30_v12, %v30_v12  ;;  %v37_v15 = vmul.f32 %v29_v13, %v29_v13  ;;  %p147_p8 = scmp.ne.s32.totalorder %s93_s20, %s146_s21  ;;  %p152_p10 = scmp.lt.s32.totalorder %s146_s21, %s146_s21 }
  0x18   :  { %p153_p11 = por %p152_p10, %p151_p9 }
  0x1a   :  { %45 = vadd.xlane.f32.xlu1 %v34_v6  ;;  %41 = vadd.xlane.f32.xlu0 %v32_v7  ;;  %p154_p12 = pnand %p153_p11, %p147_p8 }
  0x1e   :  { %49 = vadd.xlane.f32.xlu1 %v36_v10  ;;  %47 = vadd.xlane.f32.xlu0 %v35_v11 }
  0x22   :  { %53 = vadd.xlane.f32.xlu1 %v38_v14  ;;  %51 = vadd.xlane.f32.xlu0 %v37_v15 }
  0xa3   :  { %v44_v16 = vpop.xlane.xlu1 %43  ;;  %v40_v17 = vpop.xlane.xlu0 %39 }
  0xa4   :  { %v57_v18 = vadd.f32 1e-10, %v44_v16  ;;  %v55_v19 = vadd.f32 1e-10, %v40_v17 }
  0xa6   :  { %108 = vrsqrt.f32 %v57_v18 }
  0xa7   :  { %110 = vrsqrt.f32 %v55_v19  ;;  %v46_v20 = vpop.xlane.xlu1 %45  ;;  %v42_v21 = vpop.xlane.xlu0 %41 }
  0xa8   :  { %v58_v22 = vadd.f32 1e-10, %v46_v20  ;;  %v56_v23 = vadd.f32 1e-10, %v42_v21 }
  0xaa   :  { %112 = vrsqrt.f32 %v58_v22 }
  0xab   :  { %114 = vrsqrt.f32 %v56_v23  ;;  %v50_v24 = vpop.xlane.xlu1 %49  ;;  %v48_v25 = vpop.xlane.xlu0 %47 }
  0xac   :  { %v60_v26 = vadd.f32 1e-10, %v50_v24  ;;  %v59_v27 = vadd.f32 1e-10, %v48_v25 }
  0xae   :  { %116 = vrsqrt.f32 %v60_v26 }
  0xaf   :  { %118 = vrsqrt.f32 %v59_v27  ;;  %v54_v28 = vpop.xlane.xlu1 %53  ;;  %v52_v29 = vpop.xlane.xlu0 %51 }
  0xb0   :  { %v109_v30 = vpop.eup %108  ;;  %v62_v31 = vadd.f32 1e-10, %v54_v28  ;;  %v61_v32 = vadd.f32 1e-10, %v52_v29 }
  0xb1   :  { %v111_v33 = vpop.eup %110  ;;  %v73_v34 = vmul.f32 %v109_v30, %v25_v0 }
  0xb2   :  { %v71_v35 = vmul.f32 %v111_v33, %v23_v1  ;;  %120 = vrsqrt.f32 %v62_v31 }
  0xb3   :  { %81 = vst [vmem:[#allocation5 + $0x10] sm:$0xff] %v73_v34  ;;  %122 = vrsqrt.f32 %v61_v32 }
  0xb4   :  { %v113_v36 = vpop.eup %112  ;;  %79 = vst [vmem:[#allocation5] sm:$0xff] %v71_v35 }
  0xb5   :  { %v115_v37 = vpop.eup %114  ;;  %v74_v38 = vmul.f32 %v113_v36, %v26_v2 }
  0xb6   :  { %v72_v39 = vmul.f32 %v115_v37, %v24_v5 }
  0xb7   :  { %82 = vst [vmem:[#allocation5 + $0x18] sm:$0xff] %v74_v38 }
  0xb8   :  { %v117_v40 = vpop.eup %116  ;;  %80 = vst [vmem:[#allocation5 + $0x8] sm:$0xff] %v72_v39 }
  0xb9   :  { %v119_v41 = vpop.eup %118  ;;  %v76_v42 = vmul.f32 %v117_v40, %v28_v8 }
  0xba   :  { %v75_v43 = vmul.f32 %v119_v41, %v27_v9 }
  0xbb   :  { %84 = vst [vmem:[#allocation5 + $0x28] sm:$0xff] %v76_v42 }
  0xbc   :  { %v121_v44 = vpop.eup %120  ;;  %83 = vst [vmem:[#allocation5 + $0x20] sm:$0xff] %v75_v43 }
  0xbd   :  { %v123_v45 = vpop.eup %122  ;;  %v78_v46 = vmul.f32 %v121_v44, %v30_v12 }
  0xbe   :  { %v77_v47 = vmul.f32 %v123_v45, %v29_v13 }
  0xbf   :  { %86 = vst [vmem:[#allocation5 + $0x38] sm:$0xff] %v78_v46 }
  0xc0   :  { %85 = vst [vmem:[#allocation5 + $0x30] sm:$0xff] %v77_v47 }
  0xc1   :  { %157 = shalt.err (!%p154_p12)
}
  0xc2   :  { %s158_s24 = scalar_lea.hbm %s217_s1, 1024 }
  0xc3   :  { %p159_p13 = scmp.ne.s32.totalorder %s217_s1, %s158_s24  ;;  %p162_p0 = scmp.lt.u32.totalorder %s158_s24, %s217_s1 }
  0xc5   :  { %p164_p1 = pnand %p162_p0, %p159_p13 }
  0xc7   :  { %167 = shalt.err (!%p164_p1)
}
  0xc8   :  { %98 = dma.vmem_to_hbm [thread:$0]  %s93_s20, 1024, %s217_s1, [#allocation4], %s173_s16, %s173_s16, %s174_s17  }
  0xc9   :  { %170 = dma.done.wait [#allocation4], 1024  }
  0xca   :  { %171 = vsyncadd [#allocation4], 4294966272 }
  0xcb   :  { %102 = vsyncpa [#allocation3], 1 }
  0xcc   :  { %103 = vsyncpa [#allocation4], 1 }

</bundles_post_ra>
